<compile_context>
chip_gen: v6e
topology: v6e:2x2x1
jax: 0.10.0
libtpu: 0.0.40
codegen_flags: <defaults>
</compile_context>

<pallas_src>
import functools

import jax
import jax.numpy as jnp
from jax.experimental import pallas as pl
from jax.experimental.pallas import tpu as pltpu

cfg = {
    'VGG11': [64, 'M', 128, 'M', 256, 256, 'M', 512, 512, 'M', 512, 512, 'M'],
    'VGG13': [64, 64, 'M', 128, 128, 'M', 256, 256, 'M', 512, 512, 'M', 512, 512, 'M'],
    'VGG16': [64, 64, 'M', 128, 128, 'M', 256, 256, 256, 'M', 512, 512, 512, 'M',
              512, 512, 512, 'M'],
    'VGG19': [64, 64, 'M', 128, 128, 'M', 256, 256, 256, 256, 'M', 512, 512, 512, 512,
              'M', 512, 512, 512, 512, 'M'],
}

# Sized for v7x (64 MiB/TC physical VMEM): keep the scoped budget at half so
# double-buffered blocks still pipeline; comfortable on v5e/v6e (128 MiB).
_VMEM_LIMIT = 32 << 20
_BN_EPS = 1e-5


def _div_tile(m, target):
    """Largest divisor of m that is <= target (>= 1)."""
    t = max(1, min(m, target))
    while m % t:
        t -= 1
    return t


def _row_tile(m, target):
    """Largest divisor of m <= target that is a multiple of 8 (or m itself)."""
    t = max(1, min(m, target))
    while t > 0:
        if m % t == 0 and (t == m or t % 8 == 0):
            return t
        t -= 1
    return m


# ---------------------------------------------------------------------------
# Conv kernels
# ---------------------------------------------------------------------------

def _conv3x3_kernel(x_ref, w_ref, o_ref, s_ref):
    """Implicit im2col conv.

    x_ref: (TN, H+2, W+2, Cin) f32 spatially pre-padded activations
    w_ref: (9, Cin, Cout) bf16 tap-major weights
    o_ref: (TN*H*W, Cout) f32 conv output rows (accumulated in-place)
    s_ref: (1, 2, Cout) f32 per-block [sum; sumsq] over rows (for BN stats)
    """
    tn, hp, wp, cin = x_ref.shape
    h, w = hp - 2, wp - 2
    for t in range(9):
        dy, dx = t // 3, t % 3
        patch = x_ref[:, pl.ds(dy, h), pl.ds(dx, w), :].reshape(tn * h * w, cin)
        prod = jnp.dot(patch.astype(jnp.bfloat16), w_ref[t],
                       preferred_element_type=jnp.float32)
        if t == 0:
            o_ref[...] = prod
        else:
            o_ref[...] += prod
    acc = o_ref[...]
    s_ref[...] = jnp.concatenate(
        [jnp.sum(acc, axis=0, keepdims=True),
         jnp.sum(acc * acc, axis=0, keepdims=True)], axis=0)[None]


def _conv_patch_matmul_kernel(p_ref, w_ref, o_ref, s_ref):
    """Explicit-im2col conv: plain row-tiled matmul + BN partial sums."""
    acc = jnp.dot(p_ref[...], w_ref[...], preferred_element_type=jnp.float32)
    o_ref[...] = acc
    s_ref[...] = jnp.concatenate(
        [jnp.sum(acc, axis=0, keepdims=True),
         jnp.sum(acc * acc, axis=0, keepdims=True)], axis=0)[None]


def _conv3x3_fused_im2col(x, w9):
    """In-kernel im2col path (requires W % 8 == 0 and Cin % 8 == 0)."""
    n, h, w, cin = x.shape
    cout = w9.shape[-1]
    xp = jnp.pad(x, ((0, 0), (1, 1), (1, 1), (0, 0)))
    tn = _div_tile(n, max(1, 1024 // (h * w)))   # aim for ~1024 MXU rows / step
    g = n // tn
    rows = tn * h * w
    out, stats = pl.pallas_call(
        _conv3x3_kernel,
        out_shape=(jax.ShapeDtypeStruct((n * h * w, cout), jnp.float32),
                   jax.ShapeDtypeStruct((g, 2, cout), jnp.float32)),
        grid=(g,),
        in_specs=[
            pl.BlockSpec((tn, h + 2, w + 2, cin), lambda i: (i, 0, 0, 0)),
            pl.BlockSpec((9, cin, cout), lambda i: (0, 0, 0)),
        ],
        out_specs=(
            pl.BlockSpec((rows, cout), lambda i: (i, 0)),
            pl.BlockSpec((1, 2, cout), lambda i: (i, 0, 0)),
        ),
        compiler_params=pltpu.CompilerParams(
            dimension_semantics=("parallel",), vmem_limit_bytes=_VMEM_LIMIT),
    )(xp, w9)
    return out.reshape(n, h, w, cout), stats


def _conv3x3_im2col(x, w9):
    """Explicit im2col path (small spatial / tiny Cin layers)."""
    n, h, w, cin = x.shape
    cout = w9.shape[-1]
    k = 9 * cin
    xp = jnp.pad(x, ((0, 0), (1, 1), (1, 1), (0, 0)))
    cols = [xp[:, dy:dy + h, dx:dx + w, :] for dy in range(3) for dx in range(3)]
    patches = jnp.concatenate(cols, axis=-1).reshape(n * h * w, k).astype(jnp.bfloat16)
    wmat = w9.reshape(k, cout)
    m = n * h * w
    tm = _row_tile(m, 256)
    g = m // tm
    out, stats = pl.pallas_call(
        _conv_patch_matmul_kernel,
        out_shape=(jax.ShapeDtypeStruct((m, cout), jnp.float32),
                   jax.ShapeDtypeStruct((g, 2, cout), jnp.float32)),
        grid=(g,),
        in_specs=[
            pl.BlockSpec((tm, k), lambda i: (i, 0)),
            pl.BlockSpec((k, cout), lambda i: (0, 0)),
        ],
        out_specs=(
            pl.BlockSpec((tm, cout), lambda i: (i, 0)),
            pl.BlockSpec((1, 2, cout), lambda i: (i, 0, 0)),
        ),
        compiler_params=pltpu.CompilerParams(
            dimension_semantics=("parallel",), vmem_limit_bytes=_VMEM_LIMIT),
    )(patches, wmat)
    return out.reshape(n, h, w, cout), stats


def conv2d_3x3(x, w9):
    """x: (N,H,W,Cin) f32, w9: (9,Cin,Cout) bf16. Returns (out NHWC f32, stats)."""
    _, _, w, cin = x.shape
    if w % 8 == 0 and cin % 8 == 0:
        return _conv3x3_fused_im2col(x, w9)
    return _conv3x3_im2col(x, w9)


# ---------------------------------------------------------------------------
# BatchNorm (training-mode batch stats) + ReLU (+ fused MaxPool2d(2,2))
# ---------------------------------------------------------------------------

def _bn_scale_shift(stats, gamma, beta, count):
    # stats: (G, 2, C) per-block [sum, sumsq]; biased batch variance (training BN).
    s = jnp.sum(stats, axis=0)
    mean = s[0] / count
    var = jnp.maximum(s[1] / count - mean * mean, 0.0)   # clamp fp cancellation
    scale = gamma * jax.lax.rsqrt(var + _BN_EPS)
    shift = beta - mean * scale
    return scale.reshape(1, -1).astype(jnp.float32), shift.reshape(1, -1).astype(jnp.float32)


def _affine_relu_kernel(x_ref, sc_ref, sh_ref, o_ref):
    o_ref[...] = jnp.maximum(x_ref[...] * sc_ref[...] + sh_ref[...], 0.0)


def bn_relu_apply(x, scale, shift):
    n, h, w, c = x.shape
    r = n * h * w
    xf = x.reshape(r, c)
    tr = _row_tile(r, 512)
    out = pl.pallas_call(
        _affine_relu_kernel,
        out_shape=jax.ShapeDtypeStruct((r, c), jnp.float32),
        grid=(r // tr,),
        in_specs=[
            pl.BlockSpec((tr, c), lambda i: (i, 0)),
            pl.BlockSpec((1, c), lambda i: (0, 0)),
            pl.BlockSpec((1, c), lambda i: (0, 0)),
        ],
        out_specs=pl.BlockSpec((tr, c), lambda i: (i, 0)),
        compiler_params=pltpu.CompilerParams(
            dimension_semantics=("parallel",), vmem_limit_bytes=_VMEM_LIMIT),
    )(xf, scale, shift)
    return out.reshape(n, h, w, c)


def _affine_pool_kernel(x_ref, sc_ref, sh_ref, o_ref, *, relu):
    # x_ref: (TR, 2, W2, 2, C); rows index (n*H2 + h2); pool over the two size-2 axes.
    y = x_ref[...] * sc_ref[...] + sh_ref[...]
    if relu:
        y = jnp.maximum(y, 0.0)
    m = jnp.maximum(y[:, 0], y[:, 1])        # (TR, W2, 2, C)
    o_ref[...] = jnp.max(m, axis=2)          # (TR, W2, C)


def _affine_pool(x, scale, shift, relu):
    n, h, w, c = x.shape
    assert h % 2 == 0 and w % 2 == 0, "maxpool2x2 needs even H and W"
    h2, w2 = h // 2, w // 2
    xr = x.reshape(n * h2, 2, w2, 2, c)      # free reshape: pairs become unit-index dims
    r = n * h2
    padded_row = 2 * w2 * 8 * max(c, 128) * 4   # VMEM bytes per row incl. (8,128) padding
    tr = _div_tile(r, max(1, (4 << 20) // padded_row))
    out = pl.pallas_call(
        functools.partial(_affine_pool_kernel, relu=relu),
        out_shape=jax.ShapeDtypeStruct((r, w2, c), jnp.float32),
        grid=(r // tr,),
        in_specs=[
            pl.BlockSpec((tr, 2, w2, 2, c), lambda i: (i, 0, 0, 0, 0)),
            pl.BlockSpec((1, c), lambda i: (0, 0)),
            pl.BlockSpec((1, c), lambda i: (0, 0)),
        ],
        out_specs=pl.BlockSpec((tr, w2, c), lambda i: (i, 0, 0)),
        compiler_params=pltpu.CompilerParams(
            dimension_semantics=("parallel",), vmem_limit_bytes=_VMEM_LIMIT),
    )(xr, scale, shift)
    return out.reshape(n, h2, w2, c)


def bn_relu_maxpool(x, scale, shift):
    return _affine_pool(x, scale, shift, relu=True)


def maxpool2x2(x):
    c = x.shape[-1]
    return _affine_pool(x, jnp.ones((1, c), jnp.float32),
                        jnp.zeros((1, c), jnp.float32), relu=False)


# ---------------------------------------------------------------------------
# Classifier
# ---------------------------------------------------------------------------

def _linear_kernel(x_ref, w_ref, b_ref, o_ref):
    o_ref[...] = jnp.dot(x_ref[...].astype(jnp.bfloat16), w_ref[...],
                         preferred_element_type=jnp.float32) + b_ref[...]


def linear(x, w_pad, b_pad, out_dim):
    """x: (N, K) f32, w_pad: (K, Cp>=128) bf16, b_pad: (1, Cp) f32."""
    n, k = x.shape
    cp = w_pad.shape[1]
    tm = _row_tile(n, 256)
    out = pl.pallas_call(
        _linear_kernel,
        out_shape=jax.ShapeDtypeStruct((n, cp), jnp.float32),
        grid=(n // tm,),
        in_specs=[
            pl.BlockSpec((tm, k), lambda i: (i, 0)),
            pl.BlockSpec((k, cp), lambda i: (0, 0)),
            pl.BlockSpec((1, cp), lambda i: (0, 0)),
        ],
        out_specs=pl.BlockSpec((tm, cp), lambda i: (i, 0)),
        compiler_params=pltpu.CompilerParams(
            dimension_semantics=("parallel",), vmem_limit_bytes=_VMEM_LIMIT),
    )(x, w_pad, b_pad)
    return out[:, :out_dim]


# ---------------------------------------------------------------------------
# Model: deterministic parameter init + forward
# ---------------------------------------------------------------------------

def init_params(key, vgg_name='VGG11'):
    feat = []
    in_ch = 3
    for v in cfg[vgg_name]:
        if v == 'M':
            feat.append(('M', None))
            continue
        key, k1, k2, k3 = jax.random.split(key, 4)
        fan_in = in_ch * 9
        # PyTorch layout (Cout, Cin, 3, 3) -> tap-major (9, Cin, Cout), bf16 once at init.
        w = jax.random.normal(k1, (v, in_ch, 3, 3), jnp.float32) * (2.0 / fan_in) ** 0.5
        w9 = jnp.transpose(w, (2, 3, 1, 0)).reshape(9, in_ch, v).astype(jnp.bfloat16)
        gamma = 1.0 + 0.1 * jax.random.normal(k2, (v,), jnp.float32)
        beta = 0.1 * jax.random.normal(k3, (v,), jnp.float32)
        # Conv bias omitted: it cancels exactly under the training-mode BN that follows.
        feat.append(('C', (w9, gamma, beta)))
        in_ch = v
    key, k1, k2 = jax.random.split(key, 3)
    wl = jax.random.normal(k1, (10, 512), jnp.float32) * (1.0 / 512.0) ** 0.5
    bl = jax.random.normal(k2, (10,), jnp.float32) * 0.01
    # Classifier: y = x @ W^T + b, output lanes padded 10 -> 128 (lane-dense store).
    wl_pad = jnp.zeros((512, 128), jnp.float32).at[:, :10].set(wl.T).astype(jnp.bfloat16)
    bl_pad = jnp.zeros((1, 128), jnp.float32).at[0, :10].set(bl)
    return feat, (wl_pad, bl_pad)


def vgg_forward(x_nchw, feat_params, cls_params):
    # NCHW (PyTorch) -> NHWC (channels on TPU lanes).
    x = jnp.transpose(x_nchw, (0, 2, 3, 1)).astype(jnp.float32)
    i = 0
    n_layers = len(feat_params)
    while i < n_layers:
        kind, p = feat_params[i]
        if kind == 'M':
            x = maxpool2x2(x)          # only reached if an 'M' does not follow a conv
            i += 1
            continue
        w9, gamma, beta = p
        x, stats = conv2d_3x3(x, w9)
        count = jnp.float32(x.shape[0] * x.shape[1] * x.shape[2])
        scale, shift = _bn_scale_shift(stats, gamma, beta, count)
        if i + 1 < n_layers and feat_params[i + 1][0] == 'M':
            x = bn_relu_maxpool(x, scale, shift)   # fused BN + ReLU + MaxPool2d(2,2)
            i += 2
        else:
            x = bn_relu_apply(x, scale, shift)
            i += 1
    # nn.AvgPool2d(kernel_size=1, stride=1) is the identity -> skipped.
    n = x.shape[0]
    x = x.reshape(n, -1)   # spatial is 1x1 -> (N, 512); matches PyTorch NCHW flatten
    wl_pad, bl_pad = cls_params
    return linear(x, wl_pad, bl_pad, 10)


if __name__ == "__main__":
    key = jax.random.PRNGKey(0)
    pkey, xkey = jax.random.split(key)
    feat_params, cls_params = init_params(pkey, 'VGG11')
    # 32x32 spatial so the 5 maxpools reduce to 1x1 and flatten yields 512 features.
    x = jax.random.normal(xkey, (2, 3, 32, 32), jnp.float32)
    out = vgg_forward(x, feat_params, cls_params)
    jax.block_until_ready(out)
    assert out.shape == (2, 10) and out.dtype == jnp.float32
    assert bool(jnp.all(jnp.isfinite(out)))
    print("KERNEL_OK")
</pallas_src>

<mosaic_0001>
module attributes {stable_mosaic.version = 11 : i64} {
  func.func @_conv_patch_matmul_kernel(%arg0: i32, %arg1: memref<256x27xbf16, #tpu.memory_space<vmem>>, %arg2: memref<27x64xbf16, #tpu.memory_space<vmem>>, %arg3: memref<256x64xf32, #tpu.memory_space<vmem>>, %arg4: memref<1x2x64xf32, #tpu.memory_space<vmem>>) attributes {dimension_semantics = [#tpu.dimension_semantics<parallel>], iteration_bounds = array<i64: 8>, scalar_prefetch = 0 : i64, scratch_operands = 0 : i64, tpu.core_type = #tpu.core_type<tc>, window_params = [{transform_indices = @transform_0, window_bounds = array<i64: 256, 27>}, {pipeline_mode = #tpu.pipeline_mode<synchronous>, transform_indices = @transform_1, window_bounds = array<i64: 27, 64>}, {transform_indices = @transform_2, window_bounds = array<i64: 256, 64>}, {transform_indices = @transform_3, window_bounds = array<i64: 1, 2, 64>}]} {
    %c0 = arith.constant 0 : index
    %c0_0 = arith.constant 0 : index
    %0 = vector.load %arg1[%c0, %c0_0] : memref<256x27xbf16, #tpu.memory_space<vmem>>, vector<256x27xbf16>
    %c0_1 = arith.constant 0 : index
    %c0_2 = arith.constant 0 : index
    %1 = vector.load %arg2[%c0_1, %c0_2] : memref<27x64xbf16, #tpu.memory_space<vmem>>, vector<27x64xbf16>
    %cst = arith.constant dense<0.000000e+00> : vector<256x64xf32>
    %2 = tpu.matmul %0, %1, %cst {dimension_numbers = #tpu.dot_dimension_numbers<[1], [0], [0], [1], [0, 0, 1, 1], [], []>} : vector<256x27xbf16>, vector<27x64xbf16>, vector<256x64xf32> -> vector<256x64xf32>
    %c0_3 = arith.constant 0 : index
    %c0_4 = arith.constant 0 : index
    %3 = vector.load %arg3[%c0_3, %c0_4] : memref<256x64xf32, #tpu.memory_space<vmem>>, vector<256x64xf32>
    tpu.vector_store %arg3[%c0_3, %c0_4], %2 {strides = array<i32>} : memref<256x64xf32, #tpu.memory_space<vmem>>, vector<256x64xf32>,
    %cst_5 = arith.constant dense<0.000000e+00> : vector<64xf32>
    %4 = vector.multi_reduction <add>, %2, %cst_5 [0] : vector<256x64xf32> to vector<64xf32>
    %5 = vector.shape_cast %4 : vector<64xf32> to vector<1x64xf32>
    %6 = arith.mulf %2, %2 : vector<256x64xf32>
    %cst_6 = arith.constant dense<0.000000e+00> : vector<64xf32>
    %7 = vector.multi_reduction <add>, %6, %cst_6 [0] : vector<256x64xf32> to vector<64xf32>
    %8 = vector.shape_cast %7 : vector<64xf32> to vector<1x64xf32>
    %9 = tpu.concatenate %5, %8 in 0 : vector<1x64xf32>, vector<1x64xf32> -> vector<2x64xf32>
    %10 = vector.shape_cast %9 : vector<2x64xf32> to vector<1x2x64xf32>
    %c0_7 = arith.constant 0 : index
    %c0_8 = arith.constant 0 : index
    %c0_9 = arith.constant 0 : index
    %11 = vector.load %arg4[%c0_7, %c0_8, %c0_9] : memref<1x2x64xf32, #tpu.memory_space<vmem>>, vector<1x2x64xf32>
    tpu.vector_store %arg4[%c0_7, %c0_8, %c0_9], %10 {strides = array<i32>} : memref<1x2x64xf32, #tpu.memory_space<vmem>>, vector<1x2x64xf32>,
    return
  }
  func.func @transform_0(%arg0: i32) -> (i32, i32) {
    %c0_i32 = arith.constant 0 : i32
    %c0_i32_0 = arith.constant 0 : i32
    return %arg0, %c0_i32 : i32, i32
  }
  func.func @transform_1(%arg0: i32) -> (i32, i32) {
    %c0_i32 = arith.constant 0 : i32
    %c0_i32_0 = arith.constant 0 : i32
    %c0_i32_1 = arith.constant 0 : i32
    return %c0_i32, %c0_i32_0 : i32, i32
  }
  func.func @transform_2(%arg0: i32) -> (i32, i32) {
    %c0_i32 = arith.constant 0 : i32
    %c0_i32_0 = arith.constant 0 : i32
    return %arg0, %c0_i32 : i32, i32
  }
  func.func @transform_3(%arg0: i32) -> (i32, i32, i32) {
    %c0_i32 = arith.constant 0 : i32
    %c0_i32_0 = arith.constant 0 : i32
    %c0_i32_1 = arith.constant 0 : i32
    return %arg0, %c0_i32, %c0_i32_0 : i32, i32, i32
  }
}

</mosaic_0001>

<bundles_post_ra>
// kernel: tpu_custom_call.1
= control target key start
LH: loop header
LB: loop body
LE: loop exit
PB: predicated region body
PF: predicated region fallthrough
CT: control target
= control target key end

     0   :  { %9 = vsyncpa [#allocation3], 0  ;;  %s1456_s0 = inlined_call_operand.vmem [shape: bf16[2048,27], index: 0, kind: input, shape index: {}]   ;;  %s1457_s1 = inlined_call_operand.vmem [shape: bf16[27,64], index: 1, kind: input, shape index: {}]   ;;  %s1458_s2 = inlined_call_operand.vmem [shape: f32[2048,64], index: 2, kind: output, shape index: {0}]   ;;  %s1459_s3 = inlined_call_operand.hbm [shape: f32[8,2,64], index: 3, kind: output, shape index: {1}]  }
   0x1   :  { %11 = vsyncpa [#allocation3 + $0x1], 0  ;;  %s1091_s12 = smov 0   ;;  %s1093_s13 = smov 0  }
   0x2   :  { %s1095_s14 = smov 0   ;;  %s1097_s15 = smov 0  }
   0x3 LB: > { %s843_s16 = sadd.s32 4294967295, %s1067_s15   ;;  %s844_s17 = sadd.s32 4294967294, %s1067_s15   ;;  %s1067_s15 = sphi %s1097_s15, %s1465_s15   ;;  %s1063_s14 = sphi %s1095_s14, %s1464_s14   ;;  %s1059_s13 = sphi %s1093_s13, %s1463_s13   ;;  %s1055_s12 = sphi %s1091_s12, %s1462_s12  }
   0x4   : > { %s1114_s18 = sadd.s32 1, %s1067_s15   ;;  %s97_s19 = sadd.s32 1, %s1063_s14 }
   0x5   : > { %s94_s20 = ssub.s32 %s1067_s15, %s1114_s18  ;;  %p107_p0 = scmp.ne.s32.totalorder %s1063_s14, %s1059_s13 }
   0x6   : > { %p95_p1 = scmp.eq.s32.totalorder %s94_s20, 0  ;;  %p108_p2 = scmp.eq.s32.totalorder %s843_s16, 7 }
   0x7   : > { %p113_p3 = scmp.ne.s32.totalorder %s1059_s13, %s1055_s12  ;;  %p114_p4 = scmp.eq.s32.totalorder %s844_s17, 7 }
   0x8   : > { %s1124_s21 = scalar_select %p95_p1, %s1063_s14, %s97_s19  }
   0x9   : > { %p1126_p5 = por %p108_p2, %p107_p0  ;;  %p1130_p6 = por %p114_p4, %p113_p3 }
   0xa   : > { %p847_p7 = scmp.ge.s32.totalorder %s1067_s15, 1  ;;  %p144_p8 = scmp.lt.s32.totalorder %s1067_s15, 9 }
   0xc   : > { %p145_p9 = pnand %p847_p7, %p144_p8 }
   0xd   : > { %s1139_s26 = sshll.u32 (!%p145_p9), %s843_s16, 5  ;;  %s170_s11 = sand.u32 (!%p145_p9), 1, %s1059_s13  }
   0xe   : > { %148 = sbr.rel (%p145_p9) target bundleno = 322 (0x142), region = 28  ;;  %p174_p10 = scmp.lt.s32.totalorder (!%p145_p9), %s1139_s26, 255 }
   0xf   : > { %s848_s16 = sshll.u32 (!%p145_p9), %s170_s11, 1  ;;  %s1421_s25 = scalar_lea.hbm (!%p145_p9), %s1459_s3, %s1139_s26 }
  0x10   : > { %s172_s17 = scalar_lea.vmem (!%p145_p9), [#allocation2], %s848_s16  ;;  %s743_s27 = scalar_lea.sflag (!%p145_p9), [#allocation3], %s170_s11 }
  0x11   : > { %s760_s19 = sshll.u32 (!%p145_p9), %s172_s17, 4  ;;  %s761_s19 = int_to_ptr.vmem [resolvable:$true] %s760_s19 }
  0x12   : > { %s1007_s28 = scalar_lea.vmem (!%p145_p9), %s761_s19, 32 }
  0x13   : > { %v989_v0 = vld [vmem:[%s1457_s1 + $0x8] sm:$0x3f]   ;;  %vm362_vm0 = vcmask 1044480   ;;  %vm363_vm1 = vcmask 1045504   ;;  %v1069_v1 = vmov 65535   ;;  %v990_v5 = vld [vmem:[%s1457_s1] sm:$0xff]   ;;  %p1008_p11 = scmp.ne.s32.totalorder %s761_s19, %s1007_s28 }
  0x14   : > { %v364_v2 = vsel %vm362_vm0, 4294967295, %v1069_v1  ;;  %s1146_s29 = scalar_select %p174_p10, %s1139_s26, 255  ;;  %vm313_vm2 = vcmask 220160   ;;  %vm530_vm3 = vcmask 523264   ;;  %vm733_vm4 = vcmask 1040384  }
  0x15   : > { %v365_v3 = vsel %vm363_vm1, %v364_v2, 0  ;;  %vm735_vm5 = vcmask 517120   ;;  %p1009_p12 = pnand %p1008_p11, %p1126_p5 }
  0x16   : > { %v367_v4 = vand.u32 %v989_v0, %v365_v3  ;;  %s850_s30 = sshll.u32 %s1146_s29, 2  ;;  %s852_s7 = sshll.u32 %s1146_s29, 3 }
  0x17   : > { %s1152_s6 = scalar_lea.vmem %s1456_s0, %s850_s30  ;;  %s1190_s10 = scalar_lea.vmem %s1458_s2, %s852_s7 }
  0x18   : > { %909 = vmatprep.subr.bf16.mxu0 %v367_v4  ;;  %945 = vmatprep.subr.bf16.mxu1 %v367_v4  ;;  %v991_v6 = vld [vmem:[%s1152_s6] sm:$0xff]   ;;  %v992_v7 = vld [vmem:[%s1152_s6 + $0x8] sm:$0xff]   ;;  %v993_v8 = vld [vmem:[%s1152_s6 + $0x10] sm:$0xff]   ;;  %p1010_p13 = pneg %p1009_p12  ;;  %s1070_s29 = smov [#allocation2]  }
  0x19   : > { %910 = vmatpush3.bf16.msra.mxu0 %v367_v4  ;;  %947 = vmatpush3.bf16.msra.mxu1 %v367_v4  ;;  %v994_v9 = vld [vmem:[%s1152_s6 + $0x18] sm:$0xff]   ;;  %v995_v10 = vld [vmem:[%s1152_s6 + $0x20] sm:$0xff]   ;;  %v1000_v12 = vld [vmem:[%s1152_s6 + $0x48] sm:$0xff]   ;;  %s1011_s30 = sshll.u32 %s1070_s29, 4  ;;  %s1012_s30 = int_to_ptr.vmem [resolvable:$false] %s1011_s30 }
  0x1a   : > { %911 = vmatprep.subr.bf16.mxu0 %v990_v5  ;;  %946 = vmatprep.subr.bf16.mxu1 %v990_v5  ;;  %v999_v11 = vld [vmem:[%s1152_s6 + $0x40] sm:$0xff]   ;;  %v1001_v13 = vld [vmem:[%s1152_s6 + $0x50] sm:$0xff]   ;;  %v1002_v14 = vld [vmem:[%s1152_s6 + $0x58] sm:$0xff]   ;;  %s1013_s4 = scalar_lea.vmem %s1012_s30, 64  ;;  %p1014_p0 = scmp.lt.s32.totalorder %s761_s19, %s1012_s30 }
  0x1b   : > { %913 = vmatprep.mubr.msk.bf16.mxu0 %vm313_vm2, %v991_v6  ;;  %929 = vmatprep.mubr.msk.bf16.mxu1 %vm313_vm2, %v999_v11  ;;  %v1003_v15 = vld [vmem:[%s1152_s6 + $0x60] sm:$0xff]   ;;  %v996_v16 = vld [vmem:[%s1152_s6 + $0x28] sm:$0xff]   ;;  %v997_v17 = vld [vmem:[%s1152_s6 + $0x30] sm:$0xff]   ;;  %p1015_p1 = scmp.lt.s32.totalorder %s1013_s4, %s1007_s28 }
  0x1c   : > { %v1004_v18 = vld [vmem:[%s1152_s6 + $0x68] sm:$0xff]   ;;  %v1005_v19 = vld [vmem:[%s1152_s6 + $0x70] sm:$0xff]   ;;  %v998_v20 = vld [vmem:[%s1152_s6 + $0x38] sm:$0xff]  }
  0x1d   : > { %912 = vmatpush3.bf16.msra.mxu0 %v990_v5  ;;  %948 = vmatpush3.bf16.msra.mxu1 %v990_v5  ;;  %v1006_v21 = vld [vmem:[%s1152_s6 + $0x78] sm:$0xff]   ;;  %p1016_p2 = por %p1015_p1, %p1014_p0 }
  0x1f   : > { %p1017_p3 = pnand %p1016_p2, %p1010_p13 }
  0x20   : > { %914 = vmatmul.mubr.msk.bf16.vlgmr.msra.gmra.mxu0 %vm313_vm2, %v992_v7  ;;  %930 = vmatmul.mubr.msk.bf16.vlgmr.msra.gmra.mxu1 %vm313_vm2, %v1000_v12 }
  0x21   : > { %917 = vmatprep.mubr.msk.bf16.mxu0 %vm313_vm2, %v993_v8  ;;  %933 = vmatprep.mubr.msk.bf16.mxu1 %vm313_vm2, %v1001_v13 }
  0x28   : > { %918 = vmatmul.mubr.msk.bf16.gmra.mxu0 %vm313_vm2, %v994_v9  ;;  %934 = vmatmul.mubr.msk.bf16.gmra.mxu1 %vm313_vm2, %v1002_v14 }
  0x29   : > { %921 = vmatprep.mubr.msk.bf16.mxu0 %vm313_vm2, %v995_v10  ;;  %937 = vmatprep.mubr.msk.bf16.mxu1 %vm313_vm2, %v1003_v15 }
  0x30   : > { %922 = vmatmul.mubr.msk.bf16.gmra.mxu0 %vm313_vm2, %v996_v16  ;;  %938 = vmatmul.mubr.msk.bf16.gmra.mxu1 %vm313_vm2, %v1004_v18 }
  0x31   : > { %925 = vmatprep.mubr.msk.bf16.mxu0 %vm313_vm2, %v997_v17  ;;  %941 = vmatprep.mubr.msk.bf16.mxu1 %vm313_vm2, %v1005_v19 }
  0x38   : > { %926 = vmatmul.mubr.msk.bf16.gmra.mxu0 %vm313_vm2, %v998_v20  ;;  %942 = vmatmul.mubr.msk.bf16.gmra.mxu1 %vm313_vm2, %v1006_v21 }
  0xe0   : > { %v915_v22 = vpop.f32.mrf.mxu0  ;;  %v1198_v27 = vpop.f32.mrf.mxu1 }
  0xe1   : > { %533 = vst.msk [vmem:[%s1190_s10 + $0x10] sm:$0xff] %vm530_vm3, %v915_v22  ;;  %v634_v28 = vmul.f32 %v915_v22, %v915_v22  ;;  %549 = vst.msk [vmem:[%s1190_s10 + $0x90] sm:$0xff] %vm530_vm3, %v1198_v27  ;;  %v566_v35 = vsel %vm530_vm3, %v915_v22, 0.0 }
  0xe2   : > { %v403_v23 = vpop.f32.mrf.mxu0  ;;  %v1207_v34 = vpop.f32.mrf.mxu1 }
  0xe3   : > { %531 = vst.msk [vmem:[%s1190_s10] sm:$0xff] %vm530_vm3, %v403_v23  ;;  %v632_v25 = vmul.f32 %v403_v23, %v403_v23  ;;  %v563_v29 = vsel %vm530_vm3, %v403_v23, 0.0  ;;  %547 = vst.msk [vmem:[%s1190_s10 + $0x80] sm:$0xff] %vm530_vm3, %v1207_v34  ;;  %v667_v43 = vsel %vm530_vm3, %v634_v28, 0.0 }
  0xe4   : > { %v916_v24 = vpop.f32.mrf.mxu0  ;;  %v1217_v42 = vpop.f32.mrf.mxu1 }
  0xe5   : > { %534 = vst.msk [vmem:[%s1190_s10 + $0x18] sm:$0xff] %vm530_vm3, %v916_v24  ;;  %v664_v36 = vsel %vm530_vm3, %v632_v25, 0.0  ;;  %v635_v37 = vmul.f32 %v916_v24, %v916_v24  ;;  %v568_v44 = vsel %vm530_vm3, %v916_v24, 0.0  ;;  %550 = vst.msk [vmem:[%s1190_s10 + $0x98] sm:$0xff] %vm530_vm3, %v1217_v42 }
  0xe6   : > { %v406_v26 = vpop.f32.mrf.mxu0  ;;  %v1226_v49 = vpop.f32.mrf.mxu1 }
  0xe7   : > { %532 = vst.msk [vmem:[%s1190_s10 + $0x8] sm:$0xff] %vm530_vm3, %v406_v26  ;;  %v564_v30 = vsel %vm530_vm3, %v406_v26, 0.0  ;;  %v633_v31 = vmul.f32 %v406_v26, %v406_v26  ;;  %v669_v50 = vsel %vm530_vm3, %v635_v37, 0.0  ;;  %548 = vst.msk [vmem:[%s1190_s10 + $0x88] sm:$0xff] %vm530_vm3, %v1226_v49 }
  0xe8   : > { %v565_v32 = vadd.f32 %v564_v30, %v563_v29  ;;  %v919_v33 = vpop.f32.mrf.mxu0  ;;  %v1235_v55 = vpop.f32.mrf.mxu1 }
  0xe9   : > { %v665_v38 = vsel %vm530_vm3, %v633_v31, 0.0  ;;  %537 = vst.msk [vmem:[%s1190_s10 + $0x30] sm:$0xff] %vm530_vm3, %v919_v33  ;;  %v638_v56 = vmul.f32 %v919_v33, %v919_v33  ;;  %553 = vst.msk [vmem:[%s1190_s10 + $0xb0] sm:$0xff] %vm530_vm3, %v1235_v55  ;;  %v574_v0 = vsel %vm530_vm3, %v919_v33, 0.0 }
  0xea   : > { %v567_v39 = vadd.f32 %v566_v35, %v565_v32  ;;  %v666_v40 = vadd.f32 %v665_v38, %v664_v36  ;;  %v419_v41 = vpop.f32.mrf.mxu0  ;;  %v1244_v63 = vpop.f32.mrf.mxu1 }
  0xeb   : > { %535 = vst.msk [vmem:[%s1190_s10 + $0x20] sm:$0xff] %vm530_vm3, %v419_v41  ;;  %v636_v45 = vmul.f32 %v419_v41, %v419_v41  ;;  %v570_v51 = vsel %vm530_vm3, %v419_v41, 0.0  ;;  %551 = vst.msk [vmem:[%s1190_s10 + $0xa0] sm:$0xff] %vm530_vm3, %v1244_v63  ;;  %v675_v7 = vsel %vm530_vm3, %v638_v56, 0.0 }
  0xec   : > { %v668_v46 = vadd.f32 %v667_v43, %v666_v40  ;;  %v569_v47 = vadd.f32 %v568_v44, %v567_v39  ;;  %v920_v48 = vpop.f32.mrf.mxu0  ;;  %v1253_v6 = vpop.f32.mrf.mxu1 }
  0xed   : > { %538 = vst.msk [vmem:[%s1190_s10 + $0x38] sm:$0xff] %vm530_vm3, %v920_v48  ;;  %v671_v57 = vsel %vm530_vm3, %v636_v45, 0.0  ;;  %v639_v1 = vmul.f32 %v920_v48, %v920_v48  ;;  %v576_v8 = vsel %vm530_vm3, %v920_v48, 0.0  ;;  %554 = vst.msk [vmem:[%s1190_s10 + $0xb8] sm:$0xff] %vm530_vm3, %v1253_v6 }
  0xee   : > { %v571_v52 = vadd.f32 %v570_v51, %v569_v47  ;;  %v670_v53 = vadd.f32 %v669_v50, %v668_v46  ;;  %v422_v54 = vpop.f32.mrf.mxu0  ;;  %v1262_v13 = vpop.f32.mrf.mxu1 }
  0xef   : > { %536 = vst.msk [vmem:[%s1190_s10 + $0x28] sm:$0xff] %vm530_vm3, %v422_v54  ;;  %v572_v58 = vsel %vm530_vm3, %v422_v54, 0.0  ;;  %v637_v59 = vmul.f32 %v422_v54, %v422_v54  ;;  %v677_v14 = vsel %vm530_vm3, %v639_v1, 0.0  ;;  %552 = vst.msk [vmem:[%s1190_s10 + $0xa8] sm:$0xff] %vm530_vm3, %v1262_v13 }
  0xf0   : > { %v672_v60 = vadd.f32 %v671_v57, %v670_v53  ;;  %v573_v61 = vadd.f32 %v572_v58, %v571_v52  ;;  %v923_v62 = vpop.f32.mrf.mxu0  ;;  %v1271_v19 = vpop.f32.mrf.mxu1 }
  0xf1   : > { %v673_v2 = vsel %vm530_vm3, %v637_v59, 0.0  ;;  %541 = vst.msk [vmem:[%s1190_s10 + $0x50] sm:$0xff] %vm530_vm3, %v923_v62  ;;  %v642_v20 = vmul.f32 %v923_v62, %v923_v62  ;;  %557 = vst.msk [vmem:[%s1190_s10 + $0xd0] sm:$0xff] %vm530_vm3, %v1271_v19  ;;  %v582_v29 = vsel %vm530_vm3, %v923_v62, 0.0 }
  0xf2   : > { %v575_v3 = vadd.f32 %v574_v0, %v573_v61  ;;  %v674_v4 = vadd.f32 %v673_v2, %v672_v60  ;;  %v435_v5 = vpop.f32.mrf.mxu0  ;;  %v1280_v28 = vpop.f32.mrf.mxu1 }
  0xf3   : > { %539 = vst.msk [vmem:[%s1190_s10 + $0x40] sm:$0xff] %vm530_vm3, %v435_v5  ;;  %v640_v9 = vmul.f32 %v435_v5, %v435_v5  ;;  %v578_v15 = vsel %vm530_vm3, %v435_v5, 0.0  ;;  %555 = vst.msk [vmem:[%s1190_s10 + $0xc0] sm:$0xff] %vm530_vm3, %v1280_v28  ;;  %v683_v37 = vsel %vm530_vm3, %v642_v20, 0.0  ;;  %v648_v5 = vmul.f32 %v1207_v34, %v1207_v34 }
  0xf4   : > { %v676_v10 = vadd.f32 %v675_v7, %v674_v4  ;;  %v577_v11 = vadd.f32 %v576_v8, %v575_v3  ;;  %v924_v12 = vpop.f32.mrf.mxu0  ;;  %v1289_v36 = vpop.f32.mrf.mxu1 }
  0xf5   : > { %542 = vst.msk [vmem:[%s1190_s10 + $0x58] sm:$0xff] %vm530_vm3, %v924_v12  ;;  %v679_v21 = vsel %vm530_vm3, %v640_v9, 0.0  ;;  %v643_v30 = vmul.f32 %v924_v12, %v924_v12  ;;  %v584_v38 = vsel %vm530_vm3, %v924_v12, 0.0  ;;  %558 = vst.msk [vmem:[%s1190_s10 + $0xd8] sm:$0xff] %vm530_vm3, %v1289_v36  ;;  %v649_v12 = vmul.f32 %v1226_v49, %v1226_v49 }
  0xf6   : > { %v579_v16 = vadd.f32 %v578_v15, %v577_v11  ;;  %v678_v17 = vadd.f32 %v677_v14, %v676_v10  ;;  %v438_v18 = vpop.f32.mrf.mxu0  ;;  %v1298_v44 = vpop.f32.mrf.mxu1  ;;  %v594_v11 = vsel %vm530_vm3, %v1207_v34, 0.0  ;;  %v598_v34 = vsel %vm530_vm3, %v1198_v27, 0.0 }
  0xf7   : > { %540 = vst.msk [vmem:[%s1190_s10 + $0x48] sm:$0xff] %vm530_vm3, %v438_v18  ;;  %v580_v22 = vsel %vm530_vm3, %v438_v18, 0.0  ;;  %v641_v23 = vmul.f32 %v438_v18, %v438_v18  ;;  %v685_v45 = vsel %vm530_vm3, %v643_v30, 0.0  ;;  %556 = vst.msk [vmem:[%s1190_s10 + $0xc8] sm:$0xff] %vm530_vm3, %v1298_v44  ;;  %v596_v18 = vsel %vm530_vm3, %v1226_v49, 0.0 }
  0xf8   : > { %v680_v24 = vadd.f32 %v679_v21, %v678_v17  ;;  %v581_v25 = vadd.f32 %v580_v22, %v579_v16  ;;  %v927_v26 = vpop.f32.mrf.mxu0  ;;  %v1307_v51 = vpop.f32.mrf.mxu1  ;;  %v650_v16 = vmul.f32 %v1198_v27, %v1198_v27  ;;  %v695_v17 = vsel %vm530_vm3, %v648_v5, 0.0 }
  0xf9   : > { %v681_v31 = vsel %vm530_vm3, %v641_v23, 0.0  ;;  %545 = vst.msk [vmem:[%s1190_s10 + $0x70] sm:$0xff] %vm530_vm3, %v927_v26  ;;  %v646_v52 = vmul.f32 %v927_v26, %v927_v26  ;;  %561 = vst.msk [vmem:[%s1190_s10 + $0xf0] sm:$0xff] %vm530_vm3, %v1307_v51  ;;  %v590_v60 = vsel %vm530_vm3, %v927_v26, 0.0  ;;  %v651_v22 = vmul.f32 %v1217_v42, %v1217_v42 }
  0xfa   : > { %v583_v32 = vadd.f32 %v582_v29, %v581_v25  ;;  %v682_v33 = vadd.f32 %v681_v31, %v680_v24  ;;  %v451_v35 = vpop.f32.mrf.mxu0  ;;  %v1316_v59 = vpop.f32.mrf.mxu1  ;;  %v697_v23 = vsel %vm530_vm3, %v649_v12, 0.0  ;;  %v699_v26 = vsel %vm530_vm3, %v650_v16, 0.0 }
  0xfb   : > { %543 = vst.msk [vmem:[%s1190_s10 + $0x60] sm:$0xff] %vm530_vm3, %v451_v35  ;;  %v644_v39 = vmul.f32 %v451_v35, %v451_v35  ;;  %v586_v46 = vsel %vm530_vm3, %v451_v35, 0.0  ;;  %559 = vst.msk [vmem:[%s1190_s10 + $0xe0] sm:$0xff] %vm530_vm3, %v1316_v59  ;;  %v691_v3 = vsel %vm530_vm3, %v646_v52, 0.0  ;;  %v600_v29 = vsel %vm530_vm3, %v1217_v42, 0.0 }
  0xfc   : > { %v684_v40 = vadd.f32 %v683_v37, %v682_v33  ;;  %v585_v41 = vadd.f32 %v584_v38, %v583_v32  ;;  %v928_v43 = vpop.f32.mrf.mxu0  ;;  %v1323_v2 = vpop.f32.mrf.mxu1  ;;  %v652_v49 = vmul.f32 %v1244_v63, %v1244_v63  ;;  %v701_v32 = vsel %vm530_vm3, %v651_v22, 0.0 }
  0xfd   : > { %546 = vst.msk [vmem:[%s1190_s10 + $0x78] sm:$0xff] %vm530_vm3, %v928_v43  ;;  %v687_v53 = vsel %vm530_vm3, %v644_v39, 0.0  ;;  %v647_v61 = vmul.f32 %v928_v43, %v928_v43  ;;  %v592_v4 = vsel %vm530_vm3, %v928_v43, 0.0  ;;  %562 = vst.msk [vmem:[%s1190_s10 + $0xf8] sm:$0xff] %vm530_vm3, %v1323_v2  ;;  %v602_v27 = vsel %vm530_vm3, %v1244_v63, 0.0 }
  0xfe   : > { %v587_v47 = vadd.f32 %v586_v46, %v585_v41  ;;  %v686_v48 = vadd.f32 %v685_v45, %v684_v40  ;;  %v454_v50 = vpop.f32.mrf.mxu0  ;;  %v1332_v9 = vpop.f32.mrf.mxu1  ;;  %v653_v33 = vmul.f32 %v1262_v13, %v1262_v13  ;;  %v654_v38 = vmul.f32 %v1235_v55, %v1235_v55 }
  0xff   : > { %544 = vst.msk [vmem:[%s1190_s10 + $0x68] sm:$0xff] %vm530_vm3, %v454_v50  ;;  %v588_v54 = vsel %vm530_vm3, %v454_v50, 0.0  ;;  %v645_v56 = vmul.f32 %v454_v50, %v454_v50  ;;  %v693_v10 = vsel %vm530_vm3, %v647_v61, 0.0  ;;  %560 = vst.msk [vmem:[%s1190_s10 + $0xe8] sm:$0xff] %vm530_vm3, %v1332_v9  ;;  %v703_v42 = vsel %vm530_vm3, %v652_v49, 0.0 }
 0x100   : > { %v688_v57 = vadd.f32 %v687_v53, %v686_v48  ;;  %v589_v58 = vadd.f32 %v588_v54, %v587_v47  ;;  %v604_v39 = vsel %vm530_vm3, %v1262_v13, 0.0  ;;  %v606_v43 = vsel %vm530_vm3, %v1235_v55, 0.0 }
 0x101   : > { %v689_v62 = vsel %vm530_vm3, %v645_v56, 0.0  ;;  %v655_v63 = vmul.f32 %v1253_v6, %v1253_v6  ;;  %v705_v45 = vsel %vm530_vm3, %v653_v33, 0.0  ;;  %v707_v48 = vsel %vm530_vm3, %v654_v38, 0.0 }
 0x102   : > { %v591_v0 = vadd.f32 %v590_v60, %v589_v58  ;;  %v690_v1 = vadd.f32 %v689_v62, %v688_v57  ;;  %v608_v50 = vsel %vm530_vm3, %v1253_v6, 0.0  ;;  %v656_v13 = vmul.f32 %v1280_v28, %v1280_v28 }
 0x103   : > { %v709_v54 = vsel %vm530_vm3, %v655_v63, 0.0  ;;  %v610_v55 = vsel %vm530_vm3, %v1280_v28, 0.0  ;;  %v657_v56 = vmul.f32 %v1298_v44, %v1298_v44  ;;  %v658_v60 = vmul.f32 %v1271_v19, %v1271_v19 }
 0x104   : > { %v593_v7 = vadd.f32 %v592_v4, %v591_v0  ;;  %v692_v8 = vadd.f32 %v691_v3, %v690_v1  ;;  %v711_v6 = vsel %vm530_vm3, %v656_v13, 0.0  ;;  %v612_v61 = vsel %vm530_vm3, %v1298_v44, 0.0 }
 0x105   : > { %v614_v1 = vsel %vm530_vm3, %v1271_v19, 0.0  ;;  %v659_v28 = vmul.f32 %v1289_v36, %v1289_v36  ;;  %v713_v3 = vsel %vm530_vm3, %v657_v56, 0.0  ;;  %v660_v44 = vmul.f32 %v1316_v59, %v1316_v59 }
 0x106   : > { %v694_v14 = vadd.f32 %v693_v10, %v692_v8  ;;  %v595_v15 = vadd.f32 %v594_v11, %v593_v7  ;;  %v715_v7 = vsel %vm530_vm3, %v658_v60, 0.0  ;;  %v616_v8 = vsel %vm530_vm3, %v1289_v36, 0.0 }
 0x107   : > { %v717_v12 = vsel %vm530_vm3, %v659_v28, 0.0  ;;  %v618_v19 = vsel %vm530_vm3, %v1316_v59, 0.0  ;;  %v719_v36 = vsel %vm530_vm3, %v660_v44, 0.0  ;;  %v663_v59 = vmul.f32 %v1323_v2, %v1323_v2 }
 0x108   : > { %v597_v20 = vadd.f32 %v596_v18, %v595_v15  ;;  %v696_v21 = vadd.f32 %v695_v17, %v694_v14  ;;  %v661_v14 = vmul.f32 %v1332_v9, %v1332_v9  ;;  %v662_v17 = vmul.f32 %v1307_v51, %v1307_v51 }
 0x109   : > { %v620_v18 = vsel %vm530_vm3, %v1332_v9, 0.0  ;;  %v725_v9 = vsel %vm530_vm3, %v663_v59, 0.0 }
 0x10a   : > { %v599_v24 = vadd.f32 %v598_v34, %v597_v20  ;;  %v698_v25 = vadd.f32 %v697_v23, %v696_v21  ;;  %v622_v34 = vsel %vm530_vm3, %v1307_v51, 0.0  ;;  %v721_v22 = vsel %vm530_vm3, %v661_v14, 0.0 }
 0x10c   : > { %v700_v30 = vadd.f32 %v699_v26, %v698_v25  ;;  %v601_v31 = vadd.f32 %v600_v29, %v599_v24  ;;  %v723_v25 = vsel %vm530_vm3, %v662_v17, 0.0  ;;  %v624_v26 = vsel %vm530_vm3, %v1323_v2, 0.0 }
 0x10e   : > { %v603_v35 = vadd.f32 %v602_v27, %v601_v31  ;;  %v702_v37 = vadd.f32 %v701_v32, %v700_v30 }
 0x110   : > { %v704_v40 = vadd.f32 %v703_v42, %v702_v37  ;;  %v605_v41 = vadd.f32 %v604_v39, %v603_v35 }
 0x112   : > { %v607_v46 = vadd.f32 %v606_v43, %v605_v41  ;;  %v706_v47 = vadd.f32 %v705_v45, %v704_v40 }
 0x114   : > { %v708_v52 = vadd.f32 %v707_v48, %v706_v47  ;;  %v609_v53 = vadd.f32 %v608_v50, %v607_v46 }
 0x116   : > { %v611_v57 = vadd.f32 %v610_v55, %v609_v53  ;;  %v710_v58 = vadd.f32 %v709_v54, %v708_v52 }
 0x118   : > { %v712_v62 = vadd.f32 %v711_v6, %v710_v58  ;;  %v613_v0 = vadd.f32 %v612_v61, %v611_v57 }
 0x11a   : > { %v615_v4 = vadd.f32 %v614_v1, %v613_v0  ;;  %v714_v5 = vadd.f32 %v713_v3, %v712_v62 }
 0x11c   : > { %v716_v10 = vadd.f32 %v715_v7, %v714_v5  ;;  %v617_v11 = vadd.f32 %v616_v8, %v615_v4 }
 0x11e   : > { %v619_v15 = vadd.f32 %v618_v19, %v617_v11  ;;  %v718_v16 = vadd.f32 %v717_v12, %v716_v10 }
 0x120   : > { %v720_v20 = vadd.f32 %v719_v36, %v718_v16  ;;  %v621_v21 = vadd.f32 %v620_v18, %v619_v15 }
 0x122   : > { %v623_v23 = vadd.f32 %v622_v34, %v621_v21  ;;  %v722_v24 = vadd.f32 %v721_v22, %v720_v20 }
 0x124   : > { %v625_v29 = vadd.f32 %v624_v26, %v623_v23  ;;  %v724_v49 = vadd.f32 %v723_v25, %v722_v24 }
 0x126   : > { %v626_v30 = vrot.slane %v625_v29, 4  ;;  %v726_v31 = vadd.f32 %v725_v9, %v724_v49 }
 0x128   : > { %v627_v51 = vadd.f32 %v626_v30, %v625_v29  ;;  %v727_v32 = vrot.slane %v726_v31, 4 }
 0x12a   : > { %v628_v27 = vrot.slane %v627_v51, 2  ;;  %v728_v33 = vadd.f32 %v727_v32, %v726_v31 }
 0x12c   : > { %v629_v35 = vadd.f32 %v628_v27, %v627_v51  ;;  %v729_v37 = vrot.slane %v728_v33, 2 }
 0x12e   : > { %v630_v38 = vrot.slane %v629_v35, 1  ;;  %v730_v42 = vadd.f32 %v729_v37, %v728_v33 }
 0x130   : > { %v731_v39 = vrot.slane %v730_v42, 1  ;;  %v631_v2 = vadd.f32 %v630_v38, %v629_v35 }
 0x132   : > { %v732_v40 = vadd.f32 %v731_v39, %v730_v42 }
 0x134   : > { %v734_v41 = vsel %vm733_vm4, %v631_v2, %v732_v40 }
 0x135   : > { %736 = vst.msk [vmem:[%s172_s17] sm:$0x3] %vm735_vm5, %v734_v41 }
 0x136   : > { %1020 = shalt.err (!%p1017_p3)
}
 0x137   : > { %s1021_s26 = scalar_lea.hbm %s1421_s25, 32  ;;  %s1025_s7 = scalar_lea.hbm %s1459_s3, 256 }
 0x138   : > { %p1022_p4 = scmp.ne.s32.totalorder %s1421_s25, %s1021_s26  ;;  %p1026_p9 = scmp.lt.s32.totalorder %s1421_s25, %s1459_s3 }
 0x139   : > { %p1027_p10 = scmp.lt.s32.totalorder %s1025_s7, %s1021_s26 }
 0x13a   : > { %p1023_p7 = pnand %p1022_p4, %p1126_p5 }
 0x13b   : > { %p1028_p11 = por %p1027_p10, %p1026_p9 }
 0x13c   : > { %p1024_p8 = pneg %p1023_p7 }
 0x13e   : > { %p1029_p12 = pnand %p1028_p11, %p1024_p8 }
 0x140   : > { %1032 = shalt.err (!%p1029_p12)
}
 0x141   : > { %949 = dma.vmem_to_hbm [thread:$0]  (%p1126_p5), %s761_s19, 32, %s1421_s25, %s743_s27  }
 0x142 PF: > { %p955_p13 = scmp.ge.s32.totalorder %s1067_s15, 2  ;;  %s780_s10 = sand.u32 1, %s1055_s12  }
 0x143   : > { %s781_s11 = scalar_lea.sflag [#allocation3], %s780_s10 }
 0x144   : > { %p952_p0 = pnand %p955_p13, %p1130_p6 }
 0x146   : > { %p953_p1 = pneg %p952_p0 }
 0x148   : > { %1050 = dma.done.wait (%p953_p1), %s781_s11, 32  }
 0x149   : > { %1052 = vsyncadd (%p953_p1), %s781_s11, 4294967264  ;;  %p14_p2 = scmp.ge.s32.totalorder %s1114_s18, 10   ;;  %s1462_s12 = smov %s1059_s13 }
 0x14a   : > { %s1463_s13 = smov %s1063_s14  ;;  %s1464_s14 = smov %s1124_s21 }
 0x14b   : > { %s1465_s15 = smov %s1114_s18  ;;  %16 = sbr.rel (!%p14_p2) target bundleno = 3 (0x3), region = 75 }
 0x150   :  { %786 = vsyncpa [#allocation3], 1 }
 0x151   :  { %788 = vsyncpa [#allocation3 + $0x1], 1 }

</bundles_post_ra>
